<compile_context>
chip_gen: v7x
topology: tpu7x:2x2x1
jax: 0.10.0
libtpu: 0.0.40
codegen_flags: <defaults>
</compile_context>

<pallas_src>
import functools
import math

import jax
import jax.numpy as jnp
from jax.experimental import pallas as pl
from jax.experimental.pallas import tpu as pltpu


# 32 MiB is >= the default scoped VMEM on every current generation and below
# physical VMEM everywhere (v7x has 64 MiB total).  Raise toward 64-96 MiB on
# v5e/v6e (128 MiB physical) for large d_model / long sequences.
_VMEM_LIMIT_BYTES = 32 * 1024 * 1024


def _round_up(x, m):
    return ((x + m - 1) // m) * m


def _pick_kv_tile(sk, target=512):
    """KV tile must be a 128-multiple dividing sk, or the full key length.

    Partial (padded) KV tiles would inject garbage keys into the softmax, so we
    never allow them.
    """
    if sk % 128 != 0:
        return sk
    tk = min(target, sk)
    while sk % tk != 0:
        tk -= 128
    return tk


# ----------------------------------------------------------------------------
# Row-tiled linear:  y = x @ W + b
# ----------------------------------------------------------------------------
def _linear_kernel(x_ref, w_ref, b_ref, o_ref):
    # x_ref: (tm, d_in)  w_ref: (d_in, d_out)  b_ref: (1, d_out)  o_ref: (tm, d_out)
    y = jnp.dot(x_ref[...], w_ref[...], preferred_element_type=jnp.float32)
    o_ref[...] = (y + b_ref[...]).astype(o_ref.dtype)


def _linear(x2d, w, b, *, tm=256, vmem_limit_bytes=_VMEM_LIMIT_BYTES):
    n, d_in = x2d.shape
    d_out = w.shape[1]
    tm = min(tm, _round_up(n, 8))          # large MXU-friendly row tile, clamped
    grid = (pl.cdiv(n, tm),)

    itemsize = jnp.dtype(x2d.dtype).itemsize
    cost = pl.CostEstimate(
        flops=2 * n * d_in * d_out,
        transcendentals=0,
        bytes_accessed=itemsize * (x2d.size + w.size + d_out + n * d_out),
    )

    return pl.pallas_call(
        _linear_kernel,
        out_shape=jax.ShapeDtypeStruct((n, d_out), x2d.dtype),
        grid_spec=pltpu.PrefetchScalarGridSpec(
            num_scalar_prefetch=0,
            grid=grid,
            in_specs=[
                pl.BlockSpec((tm, d_in), lambda i: (i, 0)),      # row tile of x
                # Weights/bias have a constant block index (resident).  For very
                # large d_model consider pipeline_mode=pl.Buffered(1) or a
                # d_in-tiled accumulator (pattern P3) to cut weight VMEM.
                pl.BlockSpec((d_in, d_out), lambda i: (0, 0)),
                pl.BlockSpec((1, d_out), lambda i: (0, 0)),
            ],
            out_specs=pl.BlockSpec((tm, d_out), lambda i: (i, 0)),
        ),
        compiler_params=pltpu.CompilerParams(
            dimension_semantics=("parallel",),
            vmem_limit_bytes=vmem_limit_bytes,
        ),
        cost_estimate=cost,
    )(x2d, w, b.reshape(1, d_out))


# ----------------------------------------------------------------------------
# Flash-style multi-head attention core
# ----------------------------------------------------------------------------
def _attn_kernel(q_ref, k_ref, v_ref, src_ref, pad_ref, o_ref,
                 m_sc, l_sc, acc_sc, *, scale):
    # q_ref: (tq, dk)  k_ref/v_ref: (tk, dk)  src_ref: (tq, tk)  pad_ref: (1, tk)
    ki = pl.program_id(3)

    @pl.when(ki == 0)
    def _():
        m_sc[...] = jnp.full_like(m_sc, -jnp.inf)
        l_sc[...] = jnp.zeros_like(l_sc)
        acc_sc[...] = jnp.zeros_like(acc_sc)

    q = q_ref[...]
    k = k_ref[...]
    # scores = (q @ k^T) * 1/sqrt(d_k)
    s = jax.lax.dot_general(q, k, (((1,), (1,)), ((), ())),
                            preferred_element_type=jnp.float32) * scale
    # masked_fill(pad_mask == 0, -1e9), then additive src_mask — same order as
    # the reference PyTorch attention().
    s = jnp.where(pad_ref[...] == 0.0, -1e9, s)
    s = s + src_ref[...]

    # online softmax
    m_prev = m_sc[...]
    m_new = jnp.maximum(m_prev, s.max(axis=-1, keepdims=True))
    alpha = jnp.exp(m_prev - m_new)
    p = jnp.exp(s - m_new)
    l_sc[...] = alpha * l_sc[...] + p.sum(axis=-1, keepdims=True)
    acc_sc[...] = alpha * acc_sc[...] + jnp.dot(
        p.astype(v_ref.dtype), v_ref[...], preferred_element_type=jnp.float32)
    m_sc[...] = m_new

    @pl.when(ki == pl.num_programs(3) - 1)
    def _():
        o_ref[...] = (acc_sc[...] / l_sc[...]).astype(o_ref.dtype)


def _attention(q, k, v, src_b, pad_b, *, tq_target=256, tk_target=512,
               vmem_limit_bytes=_VMEM_LIMIT_BYTES):
    """q,k,v: (B, H, S, d_k); src_b: (B, Sq, Sk) additive; pad_b: (B, 1, Sk)."""
    B, H, Sq, dk = q.shape
    Sk = k.shape[2]
    tq = min(tq_target, _round_up(Sq, 8))
    tk = _pick_kv_tile(Sk, tk_target)
    scale = 1.0 / math.sqrt(dk)
    grid = (B, H, pl.cdiv(Sq, tq), pl.cdiv(Sk, tk))

    itemsize = jnp.dtype(q.dtype).itemsize
    cost = pl.CostEstimate(
        flops=4 * B * H * Sq * Sk * dk,
        transcendentals=B * H * Sq * Sk,
        bytes_accessed=itemsize * (2 * q.size + k.size + v.size)
        + 4 * (src_b.size + pad_b.size),
    )

    kernel = functools.partial(_attn_kernel, scale=scale)
    # NOTE: for small d_k (<128) the output stores are masked (vst.msk); real
    # transformer d_k (128) keeps them lane-dense.
    return pl.pallas_call(
        kernel,
        out_shape=jax.ShapeDtypeStruct((B, H, Sq, dk), q.dtype),
        grid_spec=pltpu.PrefetchScalarGridSpec(
            num_scalar_prefetch=0,
            grid=grid,
            in_specs=[
                pl.BlockSpec((None, None, tq, dk),
                             lambda b, hh, qi, ki: (b, hh, qi, 0)),   # q
                pl.BlockSpec((None, None, tk, dk),
                             lambda b, hh, qi, ki: (b, hh, ki, 0)),   # k
                pl.BlockSpec((None, None, tk, dk),
                             lambda b, hh, qi, ki: (b, hh, ki, 0)),   # v
                pl.BlockSpec((None, tq, tk),
                             lambda b, hh, qi, ki: (b, qi, ki)),      # src_mask
                pl.BlockSpec((None, 1, tk),
                             lambda b, hh, qi, ki: (b, 0, ki)),       # pad_mask
            ],
            out_specs=pl.BlockSpec((None, None, tq, dk),
                                   lambda b, hh, qi, ki: (b, hh, qi, 0)),
            scratch_shapes=[
                pltpu.VMEM((tq, 1), jnp.float32),    # running max m
                pltpu.VMEM((tq, 1), jnp.float32),    # running denom l
                pltpu.VMEM((tq, dk), jnp.float32),   # f32 accumulator
            ],
        ),
        compiler_params=pltpu.CompilerParams(
            # kv (reduction/accumulator) axis last and "arbitrary"; the rest
            # "parallel" so Mosaic can shard across both TCs on v7x.
            dimension_semantics=("parallel", "parallel", "parallel", "arbitrary"),
            vmem_limit_bytes=vmem_limit_bytes,
        ),
        cost_estimate=cost,
    )(q, k, v, src_b, pad_b)


# ----------------------------------------------------------------------------
# Full MultiHeadedAttention forward
# ----------------------------------------------------------------------------
@functools.partial(jax.jit, static_argnames=("h", "fuse_qkv"))
def mha_forward(query, key, value, src_mask, pad_mask, params, *, h,
                fuse_qkv=False):
    """query/key/value: (B, S, d_model).  params = (wq,bq,wk,bk,wv,bv,wo,bo),
    weights stored pre-transposed as (in, out).  fuse_qkv=True is only valid
    when query, key and value are the same tensor (self-attention)."""
    wq, bq, wk, bk, wv, bv, wo, bo = params
    B, Sq, d_model = query.shape
    Sk = key.shape[1]
    dk = d_model // h

    q_in = query.reshape(B * Sq, d_model)
    if fuse_qkv:
        # Self-attention: one fused (d_model, 3*d_model) matmul reads x once
        # and produces a lane-dense 3*d_model output slab.
        w_qkv = jnp.concatenate([wq, wk, wv], axis=1)
        b_qkv = jnp.concatenate([bq, bk, bv], axis=0)
        qkv = _linear(q_in, w_qkv, b_qkv)
        q2d, k2d, v2d = jnp.split(qkv, 3, axis=1)
    else:
        q2d = _linear(q_in, wq, bq)
        k2d = _linear(key.reshape(B * Sk, d_model), wk, bk)
        v2d = _linear(value.reshape(B * Sk, d_model), wv, bv)

    q4 = q2d.reshape(B, Sq, h, dk).transpose(0, 2, 1, 3)   # (B, h, Sq, dk)
    k4 = k2d.reshape(B, Sk, h, dk).transpose(0, 2, 1, 3)
    v4 = v2d.reshape(B, Sk, h, dk).transpose(0, 2, 1, 3)

    # Additive src_mask -> concrete (B, Sq, Sk); head dim (if any) is assumed
    # broadcast.  None -> zeros (no-op).
    if src_mask is None:
        src_b = jnp.zeros((B, Sq, Sk), jnp.float32)
    else:
        sm = src_mask
        if sm.ndim == 4:
            sm = sm[:, 0]
        src_b = jnp.broadcast_to(sm, (B, Sq, Sk)).astype(jnp.float32)

    # Boolean/float key padding mask -> (B, 1, Sk); None -> all ones (no-op).
    if pad_mask is None:
        pad_b = jnp.ones((B, 1, Sk), jnp.float32)
    else:
        pad_b = pad_mask.reshape(B, 1, Sk).astype(jnp.float32)

    ctx = _attention(q4, k4, v4, src_b, pad_b)              # (B, h, Sq, dk)
    ctx = ctx.transpose(0, 2, 1, 3).reshape(B * Sq, d_model)
    out = _linear(ctx, wo, bo)
    return out.reshape(B, Sq, d_model)


# ----------------------------------------------------------------------------
# Parameter init mirroring nn.Linear (weights stored as (in, out))
# ----------------------------------------------------------------------------
def init_mha_params(key, d_model, dtype=jnp.float32):
    keys = jax.random.split(key, 8)
    lim = 1.0 / math.sqrt(d_model)

    def lin(kw, kb):
        w = jax.random.uniform(kw, (d_model, d_model), dtype, -lim, lim)
        b = jax.random.uniform(kb, (d_model,), dtype, -lim, lim)
        return w, b

    wq, bq = lin(keys[0], keys[1])
    wk, bk = lin(keys[2], keys[3])
    wv, bv = lin(keys[4], keys[5])
    wo, bo = lin(keys[6], keys[7])
    return (wq, bq, wk, bk, wv, bv, wo, bo)


# ----------------------------------------------------------------------------
# Pure-JAX reference (mirrors the PyTorch module, eval-mode dropout)
# ----------------------------------------------------------------------------
def mha_reference(query, key, value, src_mask, pad_mask, params, h):
    wq, bq, wk, bk, wv, bv, wo, bo = params
    B, Sq, d_model = query.shape
    Sk = key.shape[1]
    dk = d_model // h

    def proj(x, w, b, S):
        y = x.reshape(B * S, d_model) @ w + b
        return y.reshape(B, S, h, dk).transpose(0, 2, 1, 3)

    q = proj(query, wq, bq, Sq)
    k = proj(key, wk, bk, Sk)
    v = proj(value, wv, bv, Sk)
    scores = jnp.einsum("bhqd,bhkd->bhqk", q, k) / math.sqrt(dk)
    if pad_mask is not None:
        scores = jnp.where(pad_mask[:, None, None, :] == 0, -1e9, scores)
    if src_mask is not None:
        scores = scores + src_mask
    p = jax.nn.softmax(scores, axis=-1)
    ctx = jnp.einsum("bhqk,bhkd->bhqd", p, v)
    ctx = ctx.transpose(0, 2, 1, 3).reshape(B * Sq, d_model)
    return (ctx @ wo + bo).reshape(B, Sq, d_model)


if __name__ == "__main__":
    B, S, H, D_MODEL = 2, 8, 4, 32

    root = jax.random.PRNGKey(0)
    kx, kp = jax.random.split(root)
    x = jax.random.normal(kx, (B, S, D_MODEL), jnp.float32)
    params = init_mha_params(kp, D_MODEL)

    # Additive "subsequent" (causal) src_mask, shape (1, 1, S, S).
    causal = jnp.where(jnp.tril(jnp.ones((S, S), dtype=bool)), 0.0, -1e9)
    src_mask = causal[None, None].astype(jnp.float32)
    # Key padding mask (B, S): batch 1 has its last two positions padded.
    pad_mask = jnp.ones((B, S), jnp.float32).at[1, -2:].set(0.0)

    # Self-attention (query == key == value) -> fused QKV projection.
    out = mha_forward(x, x, x, src_mask, pad_mask, params, h=H, fuse_qkv=True)
    out = jax.block_until_ready(out)

    ref = mha_reference(x, x, x, src_mask, pad_mask, params, H)
    assert out.shape == (B, S, D_MODEL)
    max_err = float(jnp.max(jnp.abs(out - ref)))
    assert jnp.allclose(out, ref, atol=1e-4, rtol=1e-4), f"max abs err {max_err}"

    print("KERNEL_OK")
</pallas_src>

<mosaic_0001>
module attributes {stable_mosaic.version = 11 : i64} {
  func.func @_linear_kernel(%arg0: i32, %arg1: memref<16x32xf32, #tpu.memory_space<vmem>>, %arg2: memref<32x96xf32, #tpu.memory_space<vmem>>, %arg3: memref<1x96xf32, #tpu.memory_space<vmem>>, %arg4: memref<16x96xf32, #tpu.memory_space<vmem>>) attributes {dimension_semantics = [#tpu.dimension_semantics<parallel>], iteration_bounds = array<i64: 1>, scalar_prefetch = 0 : i64, scratch_operands = 0 : i64, tpu.core_type = #tpu.core_type<tc>, window_params = [{transform_indices = @transform_0, window_bounds = array<i64: 16, 32>}, {pipeline_mode = #tpu.pipeline_mode<synchronous>, transform_indices = @transform_1, window_bounds = array<i64: 32, 96>}, {pipeline_mode = #tpu.pipeline_mode<synchronous>, transform_indices = @transform_2, window_bounds = array<i64: 1, 96>}, {transform_indices = @transform_3, window_bounds = array<i64: 16, 96>}]} {
    %c0 = arith.constant 0 : index
    %c0_0 = arith.constant 0 : index
    %0 = vector.load %arg1[%c0, %c0_0] : memref<16x32xf32, #tpu.memory_space<vmem>>, vector<16x32xf32>
    %c0_1 = arith.constant 0 : index
    %c0_2 = arith.constant 0 : index
    %1 = vector.load %arg2[%c0_1, %c0_2] : memref<32x96xf32, #tpu.memory_space<vmem>>, vector<32x96xf32>
    %cst = arith.constant dense<0.000000e+00> : vector<16x96xf32>
    %2 = tpu.matmul %0, %1, %cst {dimension_numbers = #tpu.dot_dimension_numbers<[1], [0], [0], [1], [0, 0, 1, 1], [], []>} : vector<16x32xf32>, vector<32x96xf32>, vector<16x96xf32> -> vector<16x96xf32>
    %c0_3 = arith.constant 0 : index
    %c0_4 = arith.constant 0 : index
    %3 = vector.load %arg3[%c0_3, %c0_4] : memref<1x96xf32, #tpu.memory_space<vmem>>, vector<1x96xf32>
    %4 = vector.broadcast %3 : vector<1x96xf32> to vector<16x96xf32>
    %5 = arith.addf %2, %4 : vector<16x96xf32>
    %c0_5 = arith.constant 0 : index
    %c0_6 = arith.constant 0 : index
    %6 = vector.load %arg4[%c0_5, %c0_6] : memref<16x96xf32, #tpu.memory_space<vmem>>, vector<16x96xf32>
    tpu.vector_store %arg4[%c0_5, %c0_6], %5 {strides = array<i32>} : memref<16x96xf32, #tpu.memory_space<vmem>>, vector<16x96xf32>,
    return
  }
  func.func @transform_0(%arg0: i32) -> (i32, i32) {
    %c0_i32 = arith.constant 0 : i32
    %c0_i32_0 = arith.constant 0 : i32
    return %arg0, %c0_i32 : i32, i32
  }
  func.func @transform_1(%arg0: i32) -> (i32, i32) {
    %c0_i32 = arith.constant 0 : i32
    %c0_i32_0 = arith.constant 0 : i32
    %c0_i32_1 = arith.constant 0 : i32
    return %c0_i32, %c0_i32_0 : i32, i32
  }
  func.func @transform_2(%arg0: i32) -> (i32, i32) {
    %c0_i32 = arith.constant 0 : i32
    %c0_i32_0 = arith.constant 0 : i32
    %c0_i32_1 = arith.constant 0 : i32
    return %c0_i32, %c0_i32_0 : i32, i32
  }
  func.func @transform_3(%arg0: i32) -> (i32, i32) {
    %c0_i32 = arith.constant 0 : i32
    %c0_i32_0 = arith.constant 0 : i32
    return %arg0, %c0_i32 : i32, i32
  }
}

module attributes {stable_mosaic.version = 11 : i64} {
  func.func @_attn_kernel(%arg0: i32, %arg1: i32, %arg2: i32, %arg3: i32, %arg4: memref<1x1x8x8xf32, #tpu.memory_space<vmem>>, %arg5: memref<1x1x8x8xf32, #tpu.memory_space<vmem>>, %arg6: memref<1x1x8x8xf32, #tpu.memory_space<vmem>>, %arg7: memref<1x8x8xf32, #tpu.memory_space<vmem>>, %arg8: memref<1x1x8xf32, #tpu.memory_space<vmem>>, %arg9: memref<1x1x8x8xf32, #tpu.memory_space<vmem>>, %arg10: memref<8x1xf32, #tpu.memory_space<vmem>>, %arg11: memref<8x1xf32, #tpu.memory_space<vmem>>, %arg12: memref<8x8xf32, #tpu.memory_space<vmem>>) attributes {dimension_semantics = [#tpu.dimension_semantics<parallel>, #tpu.dimension_semantics<parallel>, #tpu.dimension_semantics<parallel>, #tpu.dimension_semantics<arbitrary>], iteration_bounds = array<i64: 2, 4, 1, 1>, scalar_prefetch = 0 : i64, scratch_operands = 3 : i64, tpu.core_type = #tpu.core_type<tc>, window_params = [{transform_indices = @transform_0, window_bounds = array<i64: 1, 1, 8, 8>}, {transform_indices = @transform_1, window_bounds = array<i64: 1, 1, 8, 8>}, {transform_indices = @transform_2, window_bounds = array<i64: 1, 1, 8, 8>}, {transform_indices = @transform_3, window_bounds = array<i64: 1, 8, 8>}, {transform_indices = @transform_4, window_bounds = array<i64: 1, 1, 8>}, {transform_indices = @transform_5, window_bounds = array<i64: 1, 1, 8, 8>}]} {
    %c0_i32 = arith.constant 0 : i32
    %0 = arith.cmpi eq, %arg3, %c0_i32 : i32
    %1 = arith.extui %0 : i1 to i32
    %c0_i32_0 = arith.constant 0 : i32
    %2 = arith.cmpi ne, %1, %c0_i32_0 : i32
    scf.if %2 {
      %cst_38 = arith.constant 0xFF800000 : f32
      %48 = vector.broadcast %cst_38 : f32 to vector<8x1xf32>
      %c0_39 = arith.constant 0 : index
      %c0_40 = arith.constant 0 : index
      %49 = vector.load %arg10[%c0_39, %c0_40] : memref<8x1xf32, #tpu.memory_space<vmem>>, vector<8x1xf32>
      tpu.vector_store %arg10[%c0_39, %c0_40], %48 {strides = array<i32>} : memref<8x1xf32, #tpu.memory_space<vmem>>, vector<8x1xf32>,
      %cst_41 = arith.constant 0.000000e+00 : f32
      %50 = vector.broadcast %cst_41 : f32 to vector<8x1xf32>
      %c0_42 = arith.constant 0 : index
      %c0_43 = arith.constant 0 : index
      %51 = vector.load %arg11[%c0_42, %c0_43] : memref<8x1xf32, #tpu.memory_space<vmem>>, vector<8x1xf32>
      tpu.vector_store %arg11[%c0_42, %c0_43], %50 {strides = array<i32>} : memref<8x1xf32, #tpu.memory_space<vmem>>, vector<8x1xf32>,
      %cst_44 = arith.constant 0.000000e+00 : f32
      %52 = vector.broadcast %cst_44 : f32 to vector<8x8xf32>
      %c0_45 = arith.constant 0 : index
      %c0_46 = arith.constant 0 : index
      %53 = vector.load %arg12[%c0_45, %c0_46] : memref<8x8xf32, #tpu.memory_space<vmem>>, vector<8x8xf32>
      tpu.vector_store %arg12[%c0_45, %c0_46], %52 {strides = array<i32>} : memref<8x8xf32, #tpu.memory_space<vmem>>, vector<8x8xf32>,
    } else {
    }
    %c0 = arith.constant 0 : index
    %c0_1 = arith.constant 0 : index
    %c0_2 = arith.constant 0 : index
    %c0_3 = arith.constant 0 : index
    %3 = vector.load %arg4[%c0, %c0_1, %c0_2, %c0_3] : memref<1x1x8x8xf32, #tpu.memory_space<vmem>>, vector<1x1x8x8xf32>
    %4 = vector.shape_cast %3 : vector<1x1x8x8xf32> to vector<8x8xf32>
    %c0_4 = arith.constant 0 : index
    %c0_5 = arith.constant 0 : index
    %c0_6 = arith.constant 0 : index
    %c0_7 = arith.constant 0 : index
    %5 = vector.load %arg5[%c0_4, %c0_5, %c0_6, %c0_7] : memref<1x1x8x8xf32, #tpu.memory_space<vmem>>, vector<1x1x8x8xf32>
    %6 = vector.shape_cast %5 : vector<1x1x8x8xf32> to vector<8x8xf32>
    %cst = arith.constant dense<0.000000e+00> : vector<8x8xf32>
    %7 = tpu.matmul %4, %6, %cst {dimension_numbers = #tpu.dot_dimension_numbers<[1], [1], [0], [0], [0, 0, 1, 0], [], []>} : vector<8x8xf32>, vector<8x8xf32>, vector<8x8xf32> -> vector<8x8xf32>
    %cst_8 = arith.constant 0.353553385 : f32
    %8 = vector.broadcast %cst_8 : f32 to vector<8x8xf32>
    %9 = arith.mulf %7, %8 : vector<8x8xf32>
    %c0_9 = arith.constant 0 : index
    %c0_10 = arith.constant 0 : index
    %c0_11 = arith.constant 0 : index
    %10 = vector.load %arg8[%c0_9, %c0_10, %c0_11] : memref<1x1x8xf32, #tpu.memory_space<vmem>>, vector<1x1x8xf32>
    %11 = vector.shape_cast %10 : vector<1x1x8xf32> to vector<1x8xf32>
    %cst_12 = arith.constant 0.000000e+00 : f32
    %12 = vector.broadcast %cst_12 : f32 to vector<1x8xf32>
    %13 = arith.cmpf oeq, %11, %12 : vector<1x8xf32>
    %cst_13 = arith.constant -1.000000e+09 : f32
    %14 = vector.shape_cast %13 : vector<1x8xi1> to vector<1x8xi1>
    %15 = vector.broadcast %14 : vector<1x8xi1> to vector<8x8xi1>
    %16 = vector.broadcast %cst_13 : f32 to vector<8x8xf32>
    %17 = arith.select %15, %16, %9 : vector<8x8xi1>, vector<8x8xf32>
    %c0_14 = arith.constant 0 : index
    %c0_15 = arith.constant 0 : index
    %c0_16 = arith.constant 0 : index
    %18 = vector.load %arg7[%c0_14, %c0_15, %c0_16] : memref<1x8x8xf32, #tpu.memory_space<vmem>>, vector<1x8x8xf32>
    %19 = vector.shape_cast %18 : vector<1x8x8xf32> to vector<8x8xf32>
    %20 = arith.addf %17, %19 : vector<8x8xf32>
    %c0_17 = arith.constant 0 : index
    %c0_18 = arith.constant 0 : index
    %21 = vector.load %arg10[%c0_17, %c0_18] : memref<8x1xf32, #tpu.memory_space<vmem>>, vector<8x1xf32>
    %cst_19 = arith.constant dense<0xFF800000> : vector<8xf32>
    %22 = vector.multi_reduction <maximumf>, %20, %cst_19 [1] : vector<8x8xf32> to vector<8xf32>
    %23 = vector.shape_cast %22 : vector<8xf32> to vector<8x1xf32>
    %24 = arith.maximumf %21, %23 : vector<8x1xf32>
    %25 = arith.subf %21, %24 : vector<8x1xf32>
    %26 = math.exp %25 : vector<8x1xf32>
    %27 = vector.broadcast %24 : vector<8x1xf32> to vector<8x8xf32>
    %28 = arith.subf %20, %27 : vector<8x8xf32>
    %29 = math.exp %28 : vector<8x8xf32>
    %c0_20 = arith.constant 0 : index
    %c0_21 = arith.constant 0 : index
    %30 = vector.load %arg11[%c0_20, %c0_21] : memref<8x1xf32, #tpu.memory_space<vmem>>, vector<8x1xf32>
    %31 = arith.mulf %26, %30 : vector<8x1xf32>
    %cst_22 = arith.constant dense<0.000000e+00> : vector<8xf32>
    %32 = vector.multi_reduction <add>, %29, %cst_22 [1] : vector<8x8xf32> to vector<8xf32>
    %33 = vector.shape_cast %32 : vector<8xf32> to vector<8x1xf32>
    %34 = arith.addf %31, %33 : vector<8x1xf32>
    %c0_23 = arith.constant 0 : index
    %c0_24 = arith.constant 0 : index
    %35 = vector.load %arg11[%c0_23, %c0_24] : memref<8x1xf32, #tpu.memory_space<vmem>>, vector<8x1xf32>
    tpu.vector_store %arg11[%c0_23, %c0_24], %34 {strides = array<i32>} : memref<8x1xf32, #tpu.memory_space<vmem>>, vector<8x1xf32>,
    %c0_25 = arith.constant 0 : index
    %c0_26 = arith.constant 0 : index
    %36 = vector.load %arg12[%c0_25, %c0_26] : memref<8x8xf32, #tpu.memory_space<vmem>>, vector<8x8xf32>
    %37 = vector.broadcast %26 : vector<8x1xf32> to vector<8x8xf32>
    %38 = arith.mulf %37, %36 : vector<8x8xf32>
    %c0_27 = arith.constant 0 : index
    %c0_28 = arith.constant 0 : index
    %c0_29 = arith.constant 0 : index
    %c0_30 = arith.constant 0 : index
    %39 = vector.load %arg6[%c0_27, %c0_28, %c0_29, %c0_30] : memref<1x1x8x8xf32, #tpu.memory_space<vmem>>, vector<1x1x8x8xf32>
    %40 = vector.shape_cast %39 : vector<1x1x8x8xf32> to vector<8x8xf32>
    %cst_31 = arith.constant dense<0.000000e+00> : vector<8x8xf32>
    %41 = tpu.matmul %29, %40, %cst_31 {dimension_numbers = #tpu.dot_dimension_numbers<[1], [0], [0], [1], [0, 0, 1, 1], [], []>} : vector<8x8xf32>, vector<8x8xf32>, vector<8x8xf32> -> vector<8x8xf32>
    %42 = arith.addf %38, %41 : vector<8x8xf32>
    %c0_32 = arith.constant 0 : index
    %c0_33 = arith.constant 0 : index
    %43 = vector.load %arg12[%c0_32, %c0_33] : memref<8x8xf32, #tpu.memory_space<vmem>>, vector<8x8xf32>
    tpu.vector_store %arg12[%c0_32, %c0_33], %42 {strides = array<i32>} : memref<8x8xf32, #tpu.memory_space<vmem>>, vector<8x8xf32>,
    %c0_34 = arith.constant 0 : index
    %c0_35 = arith.constant 0 : index
    %44 = vector.load %arg10[%c0_34, %c0_35] : memref<8x1xf32, #tpu.memory_space<vmem>>, vector<8x1xf32>
    tpu.vector_store %arg10[%c0_34, %c0_35], %24 {strides = array<i32>} : memref<8x1xf32, #tpu.memory_space<vmem>>, vector<8x1xf32>,
    %c0_i32_36 = arith.constant 0 : i32
    %45 = arith.cmpi eq, %arg3, %c0_i32_36 : i32
    %46 = arith.extui %45 : i1 to i32
    %c0_i32_37 = arith.constant 0 : i32
    %47 = arith.cmpi ne, %46, %c0_i32_37 : i32
    scf.if %47 {
      %c0_38 = arith.constant 0 : index
      %c0_39 = arith.constant 0 : index
      %48 = vector.load %arg12[%c0_38, %c0_39] : memref<8x8xf32, #tpu.memory_space<vmem>>, vector<8x8xf32>
      %c0_40 = arith.constant 0 : index
      %c0_41 = arith.constant 0 : index
      %49 = vector.load %arg11[%c0_40, %c0_41] : memref<8x1xf32, #tpu.memory_space<vmem>>, vector<8x1xf32>
      %50 = vector.broadcast %49 : vector<8x1xf32> to vector<8x8xf32>
      %51 = arith.divf %48, %50 : vector<8x8xf32>
      %c0_42 = arith.constant 0 : index
      %c0_43 = arith.constant 0 : index
      %c0_44 = arith.constant 0 : index
      %c0_45 = arith.constant 0 : index
      %52 = vector.load %arg9[%c0_42, %c0_43, %c0_44, %c0_45] : memref<1x1x8x8xf32, #tpu.memory_space<vmem>>, vector<1x1x8x8xf32>
      %53 = vector.shape_cast %52 : vector<1x1x8x8xf32> to vector<8x8xf32>
      %54 = vector.shape_cast %51 : vector<8x8xf32> to vector<1x1x8x8xf32>
      tpu.vector_store %arg9[%c0_42, %c0_43, %c0_44, %c0_45], %54 {strides = array<i32>} : memref<1x1x8x8xf32, #tpu.memory_space<vmem>>, vector<1x1x8x8xf32>,
    } else {
    }
    return
  }
  func.func @transform_0(%arg0: i32, %arg1: i32, %arg2: i32, %arg3: i32) -> (i32, i32, i32, i32) {
    %c0_i32 = arith.constant 0 : i32
    %c0_i32_0 = arith.constant 0 : i32
    return %arg0, %arg1, %arg2, %c0_i32 : i32, i32, i32, i32
  }
  func.func @transform_1(%arg0: i32, %arg1: i32, %arg2: i32, %arg3: i32) -> (i32, i32, i32, i32) {
    %c0_i32 = arith.constant 0 : i32
    %c0_i32_0 = arith.constant 0 : i32
    return %arg0, %arg1, %arg3, %c0_i32 : i32, i32, i32, i32
  }
  func.func @transform_2(%arg0: i32, %arg1: i32, %arg2: i32, %arg3: i32) -> (i32, i32, i32, i32) {
    %c0_i32 = arith.constant 0 : i32
    %c0_i32_0 = arith.constant 0 : i32
    return %arg0, %arg1, %arg3, %c0_i32 : i32, i32, i32, i32
  }
  func.func @transform_3(%arg0: i32, %arg1: i32, %arg2: i32, %arg3: i32) -> (i32, i32, i32) {
    %c0_i32 = arith.constant 0 : i32
    return %arg0, %arg2, %arg3 : i32, i32, i32
  }
  func.func @transform_4(%arg0: i32, %arg1: i32, %arg2: i32, %arg3: i32) -> (i32, i32, i32) {
    %c0_i32 = arith.constant 0 : i32
    %c0_i32_0 = arith.constant 0 : i32
    return %arg0, %c0_i32, %arg3 : i32, i32, i32
  }
  func.func @transform_5(%arg0: i32, %arg1: i32, %arg2: i32, %arg3: i32) -> (i32, i32, i32, i32) {
    %c0_i32 = arith.constant 0 : i32
    %c0_i32_0 = arith.constant 0 : i32
    return %arg0, %arg1, %arg2, %c0_i32 : i32, i32, i32, i32
  }
}

module attributes {stable_mosaic.version = 11 : i64} {
  func.func @_linear_kernel(%arg0: i32, %arg1: memref<16x32xf32, #tpu.memory_space<vmem>>, %arg2: memref<32x32xf32, #tpu.memory_space<vmem>>, %arg3: memref<1x32xf32, #tpu.memory_space<vmem>>, %arg4: memref<16x32xf32, #tpu.memory_space<vmem>>) attributes {dimension_semantics = [#tpu.dimension_semantics<parallel>], iteration_bounds = array<i64: 1>, scalar_prefetch = 0 : i64, scratch_operands = 0 : i64, tpu.core_type = #tpu.core_type<tc>, window_params = [{transform_indices = @transform_0, window_bounds = array<i64: 16, 32>}, {pipeline_mode = #tpu.pipeline_mode<synchronous>, transform_indices = @transform_1, window_bounds = array<i64: 32, 32>}, {pipeline_mode = #tpu.pipeline_mode<synchronous>, transform_indices = @transform_2, window_bounds = array<i64: 1, 32>}, {transform_indices = @transform_3, window_bounds = array<i64: 16, 32>}]} {
    %c0 = arith.constant 0 : index
    %c0_0 = arith.constant 0 : index
    %0 = vector.load %arg1[%c0, %c0_0] : memref<16x32xf32, #tpu.memory_space<vmem>>, vector<16x32xf32>
    %c0_1 = arith.constant 0 : index
    %c0_2 = arith.constant 0 : index
    %1 = vector.load %arg2[%c0_1, %c0_2] : memref<32x32xf32, #tpu.memory_space<vmem>>, vector<32x32xf32>
    %cst = arith.constant dense<0.000000e+00> : vector<16x32xf32>
    %2 = tpu.matmul %0, %1, %cst {dimension_numbers = #tpu.dot_dimension_numbers<[1], [0], [0], [1], [0, 0, 1, 1], [], []>} : vector<16x32xf32>, vector<32x32xf32>, vector<16x32xf32> -> vector<16x32xf32>
    %c0_3 = arith.constant 0 : index
    %c0_4 = arith.constant 0 : index
    %3 = vector.load %arg3[%c0_3, %c0_4] : memref<1x32xf32, #tpu.memory_space<vmem>>, vector<1x32xf32>
    %4 = vector.broadcast %3 : vector<1x32xf32> to vector<16x32xf32>
    %5 = arith.addf %2, %4 : vector<16x32xf32>
    %c0_5 = arith.constant 0 : index
    %c0_6 = arith.constant 0 : index
    %6 = vector.load %arg4[%c0_5, %c0_6] : memref<16x32xf32, #tpu.memory_space<vmem>>, vector<16x32xf32>
    tpu.vector_store %arg4[%c0_5, %c0_6], %5 {strides = array<i32>} : memref<16x32xf32, #tpu.memory_space<vmem>>, vector<16x32xf32>,
    return
  }
  func.func @transform_0(%arg0: i32) -> (i32, i32) {
    %c0_i32 = arith.constant 0 : i32
    %c0_i32_0 = arith.constant 0 : i32
    return %arg0, %c0_i32 : i32, i32
  }
  func.func @transform_1(%arg0: i32) -> (i32, i32) {
    %c0_i32 = arith.constant 0 : i32
    %c0_i32_0 = arith.constant 0 : i32
    %c0_i32_1 = arith.constant 0 : i32
    return %c0_i32, %c0_i32_0 : i32, i32
  }
  func.func @transform_2(%arg0: i32) -> (i32, i32) {
    %c0_i32 = arith.constant 0 : i32
    %c0_i32_0 = arith.constant 0 : i32
    %c0_i32_1 = arith.constant 0 : i32
    return %c0_i32, %c0_i32_0 : i32, i32
  }
  func.func @transform_3(%arg0: i32) -> (i32, i32) {
    %c0_i32 = arith.constant 0 : i32
    %c0_i32_0 = arith.constant 0 : i32
    return %arg0, %c0_i32 : i32, i32
  }
}

</mosaic_0001>

<bundles_post_ra>
// kernel: mha_forward.3
= control target key start
LH: loop header
LB: loop body
LE: loop exit
PB: predicated region body
PF: predicated region fallthrough
CT: control target
= control target key end

     0   :  { %vm27_vm0 = vcmask 261120   ;;  %vm109_vm1 = vcmask 785408   ;;  %s191_s1 = inlined_call_operand.vmem [shape: f32[32,96], index: 1, kind: input, shape index: {}]   ;;  %s192_s0 = inlined_call_operand.vmem [shape: f32[16,32], index: 0, kind: input, shape index: {}]   ;;  %s193_s2 = inlined_call_operand.vmem [shape: f32[1,96], index: 2, kind: input, shape index: {}]   ;;  %s194_s3 = inlined_call_operand.vmem [shape: f32[16,96], index: 3, kind: output, shape index: {}]  }
   0x1   :  { %v16_v0 = vld [vmem:[%s191_s1] sm:$0xff]  ;;  %v17_v1 = vld [vmem:[%s191_s1 + $0x8] sm:$0xff]  ;;  %v18_v2 = vld [vmem:[%s191_s1 + $0x10] sm:$0xff] }
   0x2   :  { %v136_v3 = vpack.c.bf16 %v17_v1, %v16_v0  ;;  %v19_v4 = vld [vmem:[%s191_s1 + $0x18] sm:$0xff]  ;;  %v14_v5 = vld [vmem:[%s192_s0] sm:$0xff]  ;;  %v15_v7 = vld [vmem:[%s192_s0 + $0x8] sm:$0xff] }
   0x3   :  { %v140_v6 = vpack.c.bf16 %v19_v4, %v18_v2  ;;  %133 = vmatprep.mubr.msk.f32.mxu0 %vm27_vm0, %v14_v5  ;;  %v116_v8 = vld [vmem:[%s193_s2] ss:$0 sm:$0xff] }
   0x4   :  { %137 = vmatprep.subr.bf16.mxu0 %v136_v3 }
   0x5   :  { %139 = vmatpush3.bf16.msra.mxu0 %v136_v3 }
   0x6   :  { %141 = vmatprep.subr.bf16.mxu0 %v140_v6 }
   0x9   :  { %143 = vmatpush3.bf16.msra.mxu0 %v140_v6 }
   0xc   :  { %134 = vmatmul.mubr.msk.f32.vlgmr.msra.gmra.mrb[0].mxu0 %vm27_vm0, %v15_v7 }
  0xdf   :  { %v135_v9 = vpop.f32.mrb[0].mxu0 }
  0xe0   :  { %v106_v10 = vadd.f32 %v135_v9, %v116_v8  ;;  %v100_v11 = vpop.f32.mrb[1].mxu0 }
  0xe1   :  { %v101_v12 = vadd.f32 %v116_v8, %v100_v11 }
  0xe2   :  { %111 = vst.msk [vmem:[%s194_s3 + $0x8] sm:$0xff] %vm109_vm1, %v106_v10 }
  0xe3   :  { %110 = vst.msk [vmem:[%s194_s3] sm:$0xff] %vm109_vm1, %v101_v12 }

// kernel: mha_forward.5
= control target key start
LH: loop header
LB: loop body
LE: loop exit
PB: predicated region body
PF: predicated region fallthrough
CT: control target
= control target key end

     0   :  { %vm28_vm0 = vcmask 261120   ;;  %s243_s0 = inlined_call_operand.vmem [shape: f32[16,32], index: 0, kind: input, shape index: {}]   ;;  %s244_s1 = inlined_call_operand.vmem [shape: f32[32,32], index: 1, kind: input, shape index: {}]   ;;  %s245_s2 = inlined_call_operand.vmem [shape: f32[1,32], index: 2, kind: input, shape index: {}]   ;;  %s246_s3 = inlined_call_operand.hbm [shape: f32[16,32], index: 3, kind: output, shape index: {}]  }
   0x1   :  { %v17_v0 = vld [vmem:[%s244_s1] sm:$0xff]  ;;  %v18_v1 = vld [vmem:[%s244_s1 + $0x8] sm:$0xff]  ;;  %v19_v2 = vld [vmem:[%s244_s1 + $0x10] sm:$0xff] }
   0x2   :  { %v148_v3 = vpack.c.bf16 %v18_v1, %v17_v0  ;;  %v20_v4 = vld [vmem:[%s244_s1 + $0x18] sm:$0xff]  ;;  %v15_v5 = vld [vmem:[%s243_s0] sm:$0xff] }
   0x3   :  { %v152_v6 = vpack.c.bf16 %v20_v4, %v19_v2  ;;  %145 = vmatprep.mubr.msk.f32.mxu0 %vm28_vm0, %v15_v5 }
   0x4   :  { %8 = vsyncpa [#allocation3], 0  ;;  %149 = vmatprep.subr.bf16.mxu0 %v148_v3  ;;  %v16_v7 = vld [vmem:[%s243_s0 + $0x8] sm:$0xff]  ;;  %v128_v8 = vld [vmem:[%s245_s2] ss:$0 sm:$0xff]  ;;  %s183_s25 = smov [#allocation2]  }
   0x5   :  { %151 = vmatpush3.bf16.msra.mxu0 %v148_v3  ;;  %s117_s26 = sshll.u32 %s183_s25, 4  ;;  %s118_s26 = int_to_ptr.vmem [resolvable:$true] %s117_s26 }
   0x6   :  { %153 = vmatprep.subr.bf16.mxu0 %v152_v6  ;;  %s159_s27 = scalar_lea.vmem %s118_s26, 256  ;;  %p164_p1 = scmp.lt.s32.totalorder %s118_s26, %s118_s26 }
   0x7   :  { %p160_p0 = scmp.ne.s32.totalorder %s118_s26, %s159_s27  ;;  %p165_p2 = scmp.lt.s32.totalorder %s159_s27, %s159_s27 }
   0x9   :  { %155 = vmatpush3.bf16.msra.mxu0 %v152_v6  ;;  %p166_p3 = por %p165_p2, %p164_p1 }
   0xb   :  { %p167_p4 = pnand %p166_p3, %p160_p0 }
   0xc   :  { %146 = vmatmul.mubr.msk.f32.vlgmr.msra.gmra.mrb[0].mxu0 %vm28_vm0, %v16_v7 }
  0xdf   :  { %v147_v9 = vpop.f32.mrb[0].mxu0 }
  0xe0   :  { %v107_v10 = vadd.f32 %v147_v9, %v128_v8  ;;  %v101_v11 = vpop.f32.mrb[1].mxu0 }
  0xe1   :  { %v102_v12 = vadd.f32 %v128_v8, %v101_v11 }
  0xe2   :  { %111 = vst.msk [vmem:[#allocation2 + $0x8] sm:$0xff] %vm28_vm0, %v107_v10 }
  0xe3   :  { %110 = vst.msk [vmem:[#allocation2] sm:$0xff] %vm28_vm0, %v102_v12 }
  0xe4   :  { %170 = shalt.err (!%p167_p4)
}
  0xe5   :  { %s171_s28 = scalar_lea.hbm %s246_s3, 256 }
  0xe6   :  { %p172_p5 = scmp.ne.s32.totalorder %s246_s3, %s171_s28  ;;  %p175_p6 = scmp.lt.u32.totalorder %s171_s28, %s246_s3 }
  0xe8   :  { %p177_p7 = pnand %p175_p6, %p172_p5 }
  0xea   :  { %180 = shalt.err (!%p177_p7)
}
  0xeb   :  { %s184_s6 = smov 128   ;;  %s185_s7 = smov 8  }
  0xec   :  { %123 = dma.vmem_to_hbm [thread:$0]  %s118_s26, 256, %s246_s3, [#allocation3], %s184_s6, %s184_s6, %s185_s7  }
  0xed   :  { %181 = dma.done.wait [#allocation3], 256  }
  0xee   :  { %182 = vsyncadd [#allocation3], 4294967040 }
  0xef   :  { %127 = vsyncpa [#allocation3], 1 }

// kernel: mha_forward.4
= control target key start
LH: loop header
LB: loop body
LE: loop exit
PB: predicated region body
PF: predicated region fallthrough
CT: control target
= control target key end

     0   :  { %s994_s18 = smov 0   ;;  %s996_s19 = smov 0   ;;  %s1080_s0 = inlined_call_operand.vmem [shape: f32[2,4,8,8], index: 0, kind: input, shape index: {}]   ;;  %s1081_s1 = inlined_call_operand.vmem [shape: f32[2,4,8,8], index: 1, kind: input, shape index: {}]   ;;  %s1082_s2 = inlined_call_operand.vmem [shape: f32[2,4,8,8], index: 2, kind: input, shape index: {}]   ;;  %s1083_s3 = inlined_call_operand.vmem [shape: f32[2,8,8], index: 3, kind: input, shape index: {}]   ;;  %s1084_s4 = inlined_call_operand.vmem [shape: f32[2,1,8], index: 4, kind: input, shape index: {}]   ;;  %s1085_s5 = inlined_call_operand.vmem [shape: f32[2,4,8,8], index: 5, kind: output, shape index: {}]  }
   0x1   :  { %s998_s20 = smov 0   ;;  %s1000_s21 = smov 0  }
   0x2   :  { %s1002_s22 = smov 0  }
   0x3 LB: > { %s37_s23 = sadd.s32 1, %s950_s20  ;;  %s41_s24 = sadd.s32 1, %s954_s21  ;;  %s958_s22 = sphi %s1002_s22, %s15_s22   ;;  %s954_s21 = sphi %s1000_s21, %s1089_s21   ;;  %s950_s20 = sphi %s998_s20, %s1088_s20   ;;  %s946_s19 = sphi %s996_s19, %s1087_s19   ;;  %s942_s18 = sphi %s994_s18, %s1086_s18  }
   0x4   : > { %p39_p0 = scmp.ge.s32.totalorder %s37_s23, 4  ;;  %p839_p1 = scmp.ge.s32.totalorder %s958_s22, 1 }
   0x5   : > { %p299_p2 = scmp.lt.s32.totalorder %s958_s22, 9 }
   0x6   : > { %s1091_s23 = smov (%p39_p0, %s37_s23), 0  ;;  %s1093_s24 = smov (!%p39_p0, %s41_s24), %s954_s21 }
   0x7   : > { %p300_p3 = pnand %p839_p1, %p299_p2  ;;  %p43_p4 = scmp.ge.s32.totalorder %s1093_s24, 2 }
   0x8   : > { %p377_p5 = scmp.lt.s32.totalorder (!%p300_p3), %s946_s19, 1  ;;  %p379_p6 = scmp.lt.s32.totalorder (!%p300_p3), %s942_s18, 3  ;;  %vm444_vm0 = vcmask (!%p300_p3), 64512   ;;  %v960_v0 = vmov (!%p300_p3), 0.0   ;;  %vm961_vm1 = vmmov (!%p300_p3), 0   ;;  %v962_v3 = vmov (!%p300_p3), 0  }
   0x9   : > { %s1095_s24 = smov (%p43_p4, %s1093_s24), 0  ;;  %303 = sbr.rel (%p300_p3) target bundleno = 825 (0x339), region = 40 }
   0xa   : > { %858 = vmatprep.subr.mxu0 (!%p300_p3), %v960_v0  ;;  %445 = vst.msk [vmem:[#allocation4] sm:$0xff] (!%p300_p3), %vm444_vm0, %v960_v0  ;;  %860 = vmatprep.mubr.msk.f32.mxu0 (!%p300_p3), %vm961_vm1, %v960_v0  ;;  %vm441_vm2 = vcmask (!%p300_p3), 7168   ;;  %v963_v4 = vmov (!%p300_p3), -inf   ;;  %v529_v5 = vlaneseq (!%p300_p3) }
   0xb   : > { %863 = vmatprep.subr.mxu1 (!%p300_p3), %v960_v0  ;;  %865 = vmatprep.mubr.msk.f32.mxu1 (!%p300_p3), %vm961_vm1, %v960_v0  ;;  %442 = vst.msk [vmem:[#allocation2] sm:$0xff] (!%p300_p3), %vm441_vm2, %v963_v4  ;;  %443 = vst.msk [vmem:[#allocation3] sm:$0xff] (!%p300_p3), %vm441_vm2, %v960_v0 }
   0xc   : > { %912 = vset.pattern.permute.xlu0 (!%p300_p3), %v962_v3  ;;  %913 = vset.pattern.permute.xlu1 (!%p300_p3), %v962_v3  ;;  %v530_v7 = vshrl.u32 (!%p300_p3), %v529_v5, 7 }
   0xe   : > { %v531_v8 = vsub.s32 (!%p300_p3), 0, %v530_v7 }
  0x10   : > { %s1097_s19 = smov (!%p377_p5, %s946_s19), 1  ;;  %s1099_s18 = smov (!%p379_p6, %s942_s18), 3 }
  0x11   : > { %s840_s25 = sshll.u32 %s1097_s19, 2  ;;  %s425_s11 = scalar_lea.vmem %s1084_s4, %s1097_s19  ;;  %v561_v35 = vld [vmem:[#allocation4] sm:$0xff] }
  0x12   : > { %s385_s26 = sadd.s32 %s840_s25, %s1099_s18  ;;  %v526_v6 = vld [vmem:[%s425_s11] sm:$0x1]  ;;  %s846_s12 = sshll.u32 %s1097_s19, 3  ;;  %v553_v30 = vld [vmem:[#allocation3] sm:$0xff] }
  0x13   : > { %s1028_s27 = sshll.u32 %s385_s26, 3  ;;  %vm527_vm3 = vcmp.eq.f32.partialorder %v526_v6, 0.0  ;;  %s419_s15 = scalar_lea.vmem %s1083_s3, %s846_s12  ;;  %v537_v18 = vld [vmem:[#allocation2] sm:$0xff] }
  0x14   : > { %s398_s30 = scalar_lea.vmem %s1081_s1, %s1028_s27  ;;  %s387_s8 = scalar_lea.vmem %s1080_s0, %s1028_s27  ;;  %v528_v9 = vsel %vm527_vm3, 1, %v962_v3  ;;  %v535_v14 = vld [vmem:[%s419_s15] sm:$0xff] }
  0x15   : > { %v447_v1 = vld [vmem:[%s398_s30] sm:$0xff]  ;;  %v532_v10 = vrot.slane %v528_v9, %v531_v8  ;;  %s409_s18 = scalar_lea.vmem %s1082_s2, %s1028_s27  ;;  %s436_s26 = scalar_lea.vmem %s1085_s5, %s1028_s27 }
  0x16   : > { %859 = vmatpush3.xpose.msk.msra.mxu0 %vm444_vm0, %v447_v1  ;;  %v446_v2 = vld [vmem:[%s387_s8] sm:$0xff] }
  0x17   : > { %vm533_vm4 = vcmp.eq.s32.totalorder %v532_v10, 1  ;;  %v568_v22 = vld [vmem:[%s409_s18] sm:$0xff] }
  0x18   : > { %864 = vmatpush3.msra.mxu1 %v568_v22 }
  0x19   : > { %861 = vmatmul.mubr.msk.f32.vlgmr.msra.gmra.mrb[0].mxu0 %vm444_vm0, %v446_v2 }
  0xec   : > { %v521_v11 = vpop.f32.mrb[0].mxu0 }
  0xed   : > { %v525_v12 = vmul.f32 0.35355338, %v521_v11  ;;  %v862_v13 = vpop.f32.mrb[1].mxu0 }
  0xef   : > { %v534_v15 = vsel %vm533_vm4, -1e+09, %v525_v12 }
  0xf0   : > { %v536_v16 = vadd.f32 %v535_v14, %v534_v15 }
  0xf2   : > { %v538_v17 = vsel %vm444_vm0, %v536_v16, -inf }
  0xf3   : > { %539 = vmax.xlane.f32.xlu0 %v538_v17 }
 0x180   : > { %v540_v19 = vpop.xlane.xlu0 %539 }
 0x181   : > { %v541_v20 = vmax.f32 %v537_v18, %v540_v19 }
 0x183   : > { %v542_v21 = vsub.f32 %v537_v18, %v541_v20  ;;  %644 = vst.msk [vmem:[#allocation2] sm:$0xff] %vm441_vm2, %v541_v20  ;;  %547 = vperm.xlu0 %912, %v541_v20  }
 0x185   : > { %v543_v28 = vmul.f32 1.442695, %v542_v21 }
 0x202   : > { %v548_v23 = vpop.permute.xlu0 %547 }
 0x203   : > { %v550_v24 = vsub.f32 %v536_v16, %v548_v23 }
 0x205   : > { %v551_v25 = vmul.f32 1.442695, %v550_v24 }
 0x207   : > { %914 = vpow2.f32 %v551_v25 }
 0x208   : > { %916 = vpow2.f32 %v543_v28 }
 0x211   : > { %v915_v26 = vpop.eup %914 }
 0x212   : > { %866 = vmatmul.mubr.msk.f32.vlgmr.msra.gmra.mrb[0].mxu1 %vm444_vm0, %v915_v26  ;;  %v555_v27 = vsel %vm444_vm0, %v915_v26, 0.0  ;;  %v917_v29 = vpop.eup %916 }
 0x213   : > { %556 = vadd.xlane.f32.xlu1 %v555_v27  ;;  %v554_v31 = vmul.f32 %v917_v29, %v553_v30 }
 0x224   : > { %564 = vperm.xlu1 %913, %v917_v29  }
 0x2a0   : > { %v557_v32 = vpop.xlane.xlu1 %556 }
 0x2a1   : > { %v558_v33 = vadd.f32 %v557_v32, %v554_v31 }
 0x2a3   : > { %560 = vst.msk [vmem:[#allocation3] sm:$0xff] %vm441_vm2, %v558_v33 }
 0x2a4   : > { %v565_v36 = vpop.permute.xlu1 %564 }
 0x2a5   : > { %v567_v37 = vmul.f32 %v565_v36, %v561_v35 }
 0x2aa   : > { %v649_v34 = vld [vmem:[#allocation3] sm:$0xff] }
 0x2ab   : > { %652 = vperm.xlu1 %913, %v649_v34  }
 0x2e5   : > { %v638_v38 = vpop.f32.mrb[0].mxu1 }
 0x2e6   : > { %v642_v39 = vadd.f32 %v638_v38, %v567_v37  ;;  %v867_v40 = vpop.f32.mrb[1].mxu1 }
 0x2e8   : > { %643 = vst.msk [vmem:[#allocation4] sm:$0xff] %vm444_vm0, %v642_v39 }
 0x2ef   : > { %v648_v43 = vld [vmem:[#allocation4] sm:$0xff] }
 0x32a   : > { %v653_v41 = vpop.permute.xlu1 %652 }
 0x32b   : > { %918 = vrcp.f32 %v653_v41 }
 0x335   : > { %v919_v42 = vpop.eup %918 }
 0x336   : > { %v656_v44 = vmul.f32 %v919_v42, %v648_v43 }
 0x338   : > { %657 = vst.msk [vmem:[%s436_s26] sm:$0xff] %vm444_vm0, %v656_v44 }
 0x339 PF: > { %s15_s22 = sadd.s32 1, %s958_s22   ;;  %s1086_s18 = smov %s950_s20 }
 0x33a   : > { %p12_p7 = scmp.ge.s32.totalorder %s15_s22, 10   ;;  %s1087_s19 = smov %s954_s21 }
 0x33b   : > { %s1088_s20 = smov %s1091_s23  ;;  %s1089_s21 = smov %s1095_s24 }
 0x33c   :  { %14 = sbr.rel (!%p12_p7) target bundleno = 3 (0x3), region = 90 }

</bundles_post_ra>
